<compile_context>
chip_gen: v7x
topology: tpu7x:2x2x1
jax: 0.10.0
libtpu: 0.0.40
codegen_flags: <defaults>
</compile_context>

<pallas_src>
import functools

import jax
import jax.numpy as jnp
from jax.experimental import pallas as pl
from jax.experimental.pallas import tpu as pltpu


def _round_up(a, b):
    return -(-a // b) * b


def _vmem_limit_bytes():
    """Generation-aware VMEM budget (~48 MiB on v7x, ~96 MiB on v5e/v6e)."""
    try:
        cap = int(pltpu.get_tpu_info().vmem_capacity_bytes)
    except Exception:
        cap = 64 * 1024 * 1024          # conservative fallback (v7x physical)
    return min(cap * 3 // 4, 96 * 1024 * 1024)


# ---------------------------------------------------------------------------
# Pass 1a (small Cin): conv as ONE MXU contraction over K = KH*KW*Cin_pad.
# The KH*KW shifted slabs are copied (VMEM->VMEM) into a single scratch RHS so
# the systolic array sees a deep contraction instead of 9 shallow ones.
# Per-channel sum / sum-of-squares (f32, masked to valid columns) are fused.
# ---------------------------------------------------------------------------
def _conv_stats_fold_kernel(x_ref, w_ref, mask_ref, y_ref, sum_ref, sq_ref,
                            xcat_ref, *, taps, cin, tq):
    # x_ref:    (SS, Cin_pad, TQ_in) bf16  stride-phase-split row tile (+halo)
    # w_ref:    (Cout_pad, KK*Cin_pad) bf16  folded weights (resident)
    # mask_ref: (1, TQ) f32                  1.0 on valid output columns
    # y_ref:    (Cout_pad, TQ) bf16          lane-dense conv output tile
    # sum/sq:   (Cout_pad, 1) f32            per-tile partial statistics
    # xcat_ref: (KK*Cin_pad, TQ) bf16        scratch: folded RHS operand
    for kk, (phase, off) in enumerate(taps):           # static loop, KH*KW iters
        xcat_ref[pl.ds(kk * cin, cin), :] = x_ref[phase, :, pl.ds(off, tq)]
    acc = jnp.dot(w_ref[...], xcat_ref[...], preferred_element_type=jnp.float32)
    y_ref[...] = acc.astype(y_ref.dtype)
    m = mask_ref[...]                                   # (1, TQ) -> broadcasts
    am = acc * m
    sum_ref[...] = jnp.sum(am, axis=1, keepdims=True)
    sq_ref[...] = jnp.sum(acc * am, axis=1, keepdims=True)


# ---------------------------------------------------------------------------
# Pass 1b (large Cin): per-tap matmuls accumulated into an f32 VMEM scratch.
# ---------------------------------------------------------------------------
def _conv_stats_taps_kernel(x_ref, w_ref, mask_ref, y_ref, sum_ref, sq_ref,
                            acc_ref, *, taps, tq):
    for kk, (phase, off) in enumerate(taps):
        slab = x_ref[phase, :, pl.ds(off, tq)]
        d = jnp.dot(w_ref[kk], slab, preferred_element_type=jnp.float32)
        if kk == 0:
            acc_ref[...] = d
        else:
            acc_ref[...] += d
    acc = acc_ref[...]
    y_ref[...] = acc.astype(y_ref.dtype)
    m = mask_ref[...]
    am = acc * m
    sum_ref[...] = jnp.sum(am, axis=1, keepdims=True)
    sq_ref[...] = jnp.sum(acc * am, axis=1, keepdims=True)


# ---------------------------------------------------------------------------
# Pass 2: BatchNorm affine (precomputed scale/shift) + LeakyReLU(0.1).
# Compute on the full lane width; only the store restricts to the valid
# channels / columns.  Writes NCHW directly.
# ---------------------------------------------------------------------------
def _bn_lrelu_kernel(y_ref, scale_ref, shift_ref, o_ref, *, cout, wo, slope):
    z = y_ref[...].astype(jnp.float32) * scale_ref[...] + shift_ref[...]
    z = jnp.where(z >= 0, z, slope * z)
    o_ref[...] = z[:cout, :, :wo]


# ---------------------------------------------------------------------------
# Wrapper
# ---------------------------------------------------------------------------
def conv_block_forward(x, weight, bias, gamma, beta, *, stride, padding,
                       eps=1e-5, slope=0.1, tq_target=2048):
    """x: (N, Cin, H, W) f32; weight: (Cout, Cin, KH, KW); gamma/beta: (Cout,)."""
    N, Cin, H, W = x.shape
    Cout, Cin_w, KH, KW = weight.shape
    assert Cin_w == Cin
    s, p = int(stride), int(padding)
    Hp, Wp = H + 2 * p, W + 2 * p
    Ho = (Hp - KH) // s + 1
    Wo = (Wp - KW) // s + 1
    SS = s * s
    Hph = -(-Hp // s)                       # rows / cols per stride phase
    Wph = -(-Wp // s)
    KK = KH * KW
    Cin_pad = _round_up(Cin, 16)            # bf16 sublane/lane granule
    Cout_pad = _round_up(Cout, 16)
    HALO = ((KH - 1) // s) * Wph + (KW - 1) // s

    vmem_limit = _vmem_limit_bytes()
    # TODO(synk): gate per generation (v5e: Cin<128, v6e/v7x: Cin<256).
    fold = (KK > 1) and (Cin_pad <= 128)

    def step_bytes(tho):
        tq = tho * Wph
        tq_in = _round_up(tq + HALO, 128)
        tql = _round_up(tq, 128)
        b = 2 * SS * Cin_pad * tq_in * 2              # x tile, double-buffered
        b += 2 * Cout_pad * tql * 2                   # y tile, double-buffered
        b += 2 * Cout_pad * KK * Cin_pad * 2          # weights
        b += (KK * Cin_pad * tql * 2) if fold else (Cout_pad * tql * 4)
        b += 4 * Cout_pad * 128 * 4 + 2 * tql * 4     # stats + mask
        return b + (1 << 20)

    # Row-tile height: a divisor of Ho that is a multiple of 8 (or Ho itself),
    # the smallest one reaching ~tq_target columns that fits half the VMEM budget.
    budget = vmem_limit // 2
    cands = sorted(d for d in range(1, Ho + 1)
                   if Ho % d == 0 and (d % 8 == 0 or d == Ho))
    THo = cands[0]
    for d in cands:
        if step_bytes(d) > budget:
            break
        THo = d
        if d * Wph >= tq_target:
            break
    nHT = Ho // THo
    TQ = THo * Wph
    TQ_in = _round_up(TQ + HALO, 128)

    # static (phase, flat offset) per filter tap
    taps = tuple(((kh % s) * s + (kw % s), (kh // s) * Wph + (kw // s))
                 for kh in range(KH) for kw in range(KW))

    # --- XLA glue (O(input) bytes): pad, stride-phase split, flatten, row tiles
    xb = x.astype(jnp.bfloat16)
    xb = jnp.pad(xb, ((0, 0), (0, Cin_pad - Cin), (p, p), (p, p)))
    if s == 1:
        xph = xb[:, None]                               # (N, 1, Cin_pad, Hp, Wp)
    else:
        phases = []
        for a in range(s):
            for b_ in range(s):
                ph = xb[:, :, a::s, b_::s]
                ph = jnp.pad(ph, ((0, 0), (0, 0),
                                  (0, Hph - ph.shape[2]),
                                  (0, Wph - ph.shape[3])))
                phases.append(ph)
        xph = jnp.stack(phases, axis=1)                 # (N, s*s, Cin_pad, Hph, Wph)
    x_flat = xph.reshape(N, SS, Cin_pad, Hph * Wph)
    L_need = (nHT - 1) * TQ + TQ_in
    L_tot = max(Hph * Wph, L_need)
    if L_tot > Hph * Wph:
        x_flat = jnp.pad(x_flat, ((0, 0), (0, 0), (0, 0), (0, L_tot - Hph * Wph)))
    x_tiled = jnp.stack([x_flat[..., t * TQ: t * TQ + TQ_in] for t in range(nHT)],
                        axis=1)                         # (N, nHT, SS, Cin_pad, TQ_in)

    # conv bias is a per-channel constant: cancels exactly under train-mode BN.
    del bias

    w_pad = jnp.pad(weight, ((0, Cout_pad - Cout), (0, Cin_pad - Cin), (0, 0), (0, 0)))
    if fold:
        w_arg = (w_pad.transpose(0, 2, 3, 1)
                 .reshape(Cout_pad, KK * Cin_pad).astype(jnp.bfloat16))
        w_spec = pl.BlockSpec((Cout_pad, KK * Cin_pad), lambda n, t: (0, 0))
        kern1 = functools.partial(_conv_stats_fold_kernel,
                                  taps=taps, cin=Cin_pad, tq=TQ)
        scratch1 = [pltpu.VMEM((KK * Cin_pad, TQ), jnp.bfloat16)]
    else:
        w_arg = (w_pad.transpose(2, 3, 0, 1)
                 .reshape(KK, Cout_pad, Cin_pad).astype(jnp.bfloat16))
        w_spec = pl.BlockSpec((KK, Cout_pad, Cin_pad), lambda n, t: (0, 0, 0))
        kern1 = functools.partial(_conv_stats_taps_kernel, taps=taps, tq=TQ)
        scratch1 = [pltpu.VMEM((Cout_pad, TQ), jnp.float32)]

    # valid-column mask (identical for every row tile: tiles are row-aligned)
    mask = (jnp.arange(TQ, dtype=jnp.int32) % Wph < Wo).astype(jnp.float32)
    mask = mask.reshape(1, TQ)

    # ---- Pass 1: conv + fused per-channel statistics -------------------------
    y, psum, psq = pl.pallas_call(
        kern1,
        out_shape=(jax.ShapeDtypeStruct((N, nHT, Cout_pad, TQ), jnp.bfloat16),
                   jax.ShapeDtypeStruct((N, nHT, Cout_pad, 1), jnp.float32),
                   jax.ShapeDtypeStruct((N, nHT, Cout_pad, 1), jnp.float32)),
        grid_spec=pltpu.PrefetchScalarGridSpec(
            num_scalar_prefetch=0,
            grid=(N, nHT),
            in_specs=[
                pl.BlockSpec((None, None, SS, Cin_pad, TQ_in),
                             lambda n, t: (n, t, 0, 0, 0)),
                w_spec,
                pl.BlockSpec((1, TQ), lambda n, t: (0, 0)),
            ],
            out_specs=(
                pl.BlockSpec((None, None, Cout_pad, TQ), lambda n, t: (n, t, 0, 0)),
                pl.BlockSpec((None, None, Cout_pad, 1), lambda n, t: (n, t, 0, 0)),
                pl.BlockSpec((None, None, Cout_pad, 1), lambda n, t: (n, t, 0, 0)),
            ),
            scratch_shapes=scratch1),
        compiler_params=pltpu.CompilerParams(
            dimension_semantics=("parallel", "parallel"),
            vmem_limit_bytes=vmem_limit),
    )(x_tiled, w_arg, mask)

    # ---- tiny XLA glue: reduce partials, build BN scale/shift ----------------
    count = float(N * Ho * Wo)
    ch_sum = jnp.sum(psum, axis=(0, 1))[:, 0]                 # (Cout_pad,)
    ch_sq = jnp.sum(psq, axis=(0, 1))[:, 0]
    mean = ch_sum / count
    var = jnp.maximum(ch_sq / count - mean * mean, 0.0)
    # TODO(synk): shifted-sum / two-pass variance if E[y^2]-E[y]^2 cancellation
    #             ever matters for very large N*Ho*Wo.
    inv = jax.lax.rsqrt(var + eps)
    gamma_p = jnp.pad(gamma, (0, Cout_pad - Cout), constant_values=1.0)
    beta_p = jnp.pad(beta, (0, Cout_pad - Cout))
    scale = (gamma_p * inv).reshape(Cout_pad, 1, 1).astype(jnp.float32)
    shift = (beta_p - mean * gamma_p * inv).reshape(Cout_pad, 1, 1).astype(jnp.float32)

    # ---- Pass 2: BN + LeakyReLU, row tiles, direct NCHW output ---------------
    y5 = y.reshape(N, nHT, Cout_pad, THo, Wph)                # free (metadata) reshape
    out = pl.pallas_call(
        functools.partial(_bn_lrelu_kernel, cout=Cout, wo=Wo, slope=slope),
        out_shape=jax.ShapeDtypeStruct((N, Cout, Ho, Wo), jnp.float32),
        grid_spec=pltpu.PrefetchScalarGridSpec(
            num_scalar_prefetch=0,
            grid=(N, nHT),
            in_specs=[
                pl.BlockSpec((None, None, Cout_pad, THo, Wph),
                             lambda n, t: (n, t, 0, 0, 0)),
                pl.BlockSpec((Cout_pad, 1, 1), lambda n, t: (0, 0, 0)),
                pl.BlockSpec((Cout_pad, 1, 1), lambda n, t: (0, 0, 0)),
            ],
            out_specs=pl.BlockSpec((None, Cout, THo, Wo), lambda n, t: (n, 0, t, 0)),
        ),
        compiler_params=pltpu.CompilerParams(
            dimension_semantics=("parallel", "parallel"),
            vmem_limit_bytes=vmem_limit),
    )(y5, scale, shift)
    return out


# ---------------------------------------------------------------------------
# Pure-JAX reference (matches PyTorch conv_block in training mode)
# ---------------------------------------------------------------------------
def _reference(x, weight, bias, gamma, beta, *, stride, padding,
               eps=1e-5, slope=0.1, conv_dtype=jnp.float32):
    y = jax.lax.conv_general_dilated(
        x.astype(conv_dtype), weight.astype(conv_dtype),
        window_strides=(stride, stride),
        padding=[(padding, padding), (padding, padding)],
        dimension_numbers=("NCHW", "OIHW", "NCHW"),
        preferred_element_type=jnp.float32)
    if bias is not None:
        y = y + bias[None, :, None, None]
    mean = y.mean(axis=(0, 2, 3))
    var = y.var(axis=(0, 2, 3))                # biased, like torch BN (training)
    yn = (y - mean[None, :, None, None]) * jax.lax.rsqrt(var + eps)[None, :, None, None]
    yn = yn * gamma[None, :, None, None] + beta[None, :, None, None]
    return jnp.where(yn >= 0, yn, slope * yn)


if __name__ == "__main__":
    key = jax.random.PRNGKey(0)

    configs = [
        # (N, Cin, H, W, Cout, K, stride, padding) -- darknet conv_block shapes
        (2, 4, 16, 16, 8, 3, 1, 1),
        (2, 4, 16, 16, 8, 3, 2, 1),
        (1, 3, 32, 32, 12, 3, 1, 1),   # odd Cin/Cout (padding path) + 4 row tiles
    ]
    for idx, (N, Cin, H, W, Cout, K, s, p) in enumerate(configs):
        kx, kw_, kg, kb = jax.random.split(jax.random.fold_in(key, idx), 4)
        x = jax.random.normal(kx, (N, Cin, H, W), jnp.float32)
        weight = jax.random.normal(kw_, (Cout, Cin, K, K), jnp.float32) * 0.1
        bias = None                    # darknet conv_block uses bias=False with BN
        gamma = 1.0 + 0.1 * jax.random.normal(kg, (Cout,), jnp.float32)
        beta = 0.1 * jax.random.normal(kb, (Cout,), jnp.float32)

        out = conv_block_forward(x, weight, bias, gamma, beta,
                                 stride=s, padding=p, tq_target=128)
        out = jax.block_until_ready(out)

        Ho = (H + 2 * p - K) // s + 1
        Wo = (W + 2 * p - K) // s + 1
        assert out.shape == (N, Cout, Ho, Wo), out.shape

        # semantics check vs a reference that feeds bf16 operands to the conv
        ref_bf = _reference(x, weight, bias, gamma, beta, stride=s, padding=p,
                            conv_dtype=jnp.bfloat16)
        err_bf = float(jnp.max(jnp.abs(out - ref_bf)))
        assert err_bf < 3e-2, f"cfg{idx}: bf16-ref max err {err_bf}"

        # sanity check vs the full-f32 reference (bf16 MXU + bf16-y tolerance)
        ref_f32 = _reference(x, weight, bias, gamma, beta, stride=s, padding=p)
        err_f32 = float(jnp.max(jnp.abs(out - ref_f32)))
        assert err_f32 < 8e-2, f"cfg{idx}: f32-ref max err {err_f32}"

    print("KERNEL_OK")
</pallas_src>

<mosaic_0001>
module attributes {stable_mosaic.version = 11 : i64} {
  func.func @_conv_stats_fold_kernel(%arg0: i32, %arg1: i32, %arg2: memref<1x1x1x16x256xbf16, #tpu.memory_space<vmem>>, %arg3: memref<16x144xbf16, #tpu.memory_space<vmem>>, %arg4: memref<1x144xf32, #tpu.memory_space<vmem>>, %arg5: memref<1x1x16x144xbf16, #tpu.memory_space<vmem>>, %arg6: memref<1x1x16x1xf32, #tpu.memory_space<vmem>>, %arg7: memref<1x1x16x1xf32, #tpu.memory_space<vmem>>, %arg8: memref<144x144xbf16, #tpu.memory_space<vmem>>) attributes {dimension_semantics = [#tpu.dimension_semantics<parallel>, #tpu.dimension_semantics<parallel>], iteration_bounds = array<i64: 2, 2>, scalar_prefetch = 0 : i64, scratch_operands = 1 : i64, tpu.core_type = #tpu.core_type<tc>, window_params = [{transform_indices = @transform_0, window_bounds = array<i64: 1, 1, 1, 16, 256>}, {pipeline_mode = #tpu.pipeline_mode<synchronous>, transform_indices = @transform_1, window_bounds = array<i64: 16, 144>}, {pipeline_mode = #tpu.pipeline_mode<synchronous>, transform_indices = @transform_2, window_bounds = array<i64: 1, 144>}, {transform_indices = @transform_3, window_bounds = array<i64: 1, 1, 16, 144>}, {transform_indices = @transform_4, window_bounds = array<i64: 1, 1, 16, 1>}, {transform_indices = @transform_5, window_bounds = array<i64: 1, 1, 16, 1>}]} {
    %c0 = arith.constant 0 : index
    %c0_0 = arith.constant 0 : index
    %c0_1 = arith.constant 0 : index
    %c0_2 = arith.constant 0 : index
    %c0_3 = arith.constant 0 : index
    %0 = vector.load %arg2[%c0, %c0_0, %c0_1, %c0_2, %c0_3] : memref<1x1x1x16x256xbf16, #tpu.memory_space<vmem>>, vector<1x1x1x16x144xbf16>
    %1 = vector.shape_cast %0 : vector<1x1x1x16x144xbf16> to vector<16x144xbf16>
    %c0_4 = arith.constant 0 : index
    %c0_5 = arith.constant 0 : index
    %2 = vector.load %arg8[%c0_4, %c0_5] : memref<144x144xbf16, #tpu.memory_space<vmem>>, vector<16x144xbf16>
    tpu.vector_store %arg8[%c0_4, %c0_5], %1 {strides = array<i32>} : memref<144x144xbf16, #tpu.memory_space<vmem>>, vector<16x144xbf16>,
    %c0_6 = arith.constant 0 : index
    %c0_7 = arith.constant 0 : index
    %c0_8 = arith.constant 0 : index
    %c0_9 = arith.constant 0 : index
    %c1 = arith.constant 1 : index
    %3 = vector.load %arg2[%c0_6, %c0_7, %c0_8, %c0_9, %c1] : memref<1x1x1x16x256xbf16, #tpu.memory_space<vmem>>, vector<1x1x1x16x144xbf16>
    %4 = vector.shape_cast %3 : vector<1x1x1x16x144xbf16> to vector<16x144xbf16>
    %c16 = arith.constant 16 : index
    %c0_10 = arith.constant 0 : index
    %5 = vector.load %arg8[%c16, %c0_10] : memref<144x144xbf16, #tpu.memory_space<vmem>>, vector<16x144xbf16>
    tpu.vector_store %arg8[%c16, %c0_10], %4 {strides = array<i32>} : memref<144x144xbf16, #tpu.memory_space<vmem>>, vector<16x144xbf16>,
    %c0_11 = arith.constant 0 : index
    %c0_12 = arith.constant 0 : index
    %c0_13 = arith.constant 0 : index
    %c0_14 = arith.constant 0 : index
    %c2 = arith.constant 2 : index
    %6 = vector.load %arg2[%c0_11, %c0_12, %c0_13, %c0_14, %c2] : memref<1x1x1x16x256xbf16, #tpu.memory_space<vmem>>, vector<1x1x1x16x144xbf16>
    %7 = vector.shape_cast %6 : vector<1x1x1x16x144xbf16> to vector<16x144xbf16>
    %c32 = arith.constant 32 : index
    %c0_15 = arith.constant 0 : index
    %8 = vector.load %arg8[%c32, %c0_15] : memref<144x144xbf16, #tpu.memory_space<vmem>>, vector<16x144xbf16>
    tpu.vector_store %arg8[%c32, %c0_15], %7 {strides = array<i32>} : memref<144x144xbf16, #tpu.memory_space<vmem>>, vector<16x144xbf16>,
    %c0_16 = arith.constant 0 : index
    %c0_17 = arith.constant 0 : index
    %c0_18 = arith.constant 0 : index
    %c0_19 = arith.constant 0 : index
    %c18 = arith.constant 18 : index
    %9 = vector.load %arg2[%c0_16, %c0_17, %c0_18, %c0_19, %c18] : memref<1x1x1x16x256xbf16, #tpu.memory_space<vmem>>, vector<1x1x1x16x144xbf16>
    %10 = vector.shape_cast %9 : vector<1x1x1x16x144xbf16> to vector<16x144xbf16>
    %c48 = arith.constant 48 : index
    %c0_20 = arith.constant 0 : index
    %11 = vector.load %arg8[%c48, %c0_20] : memref<144x144xbf16, #tpu.memory_space<vmem>>, vector<16x144xbf16>
    tpu.vector_store %arg8[%c48, %c0_20], %10 {strides = array<i32>} : memref<144x144xbf16, #tpu.memory_space<vmem>>, vector<16x144xbf16>,
    %c0_21 = arith.constant 0 : index
    %c0_22 = arith.constant 0 : index
    %c0_23 = arith.constant 0 : index
    %c0_24 = arith.constant 0 : index
    %c19 = arith.constant 19 : index
    %12 = vector.load %arg2[%c0_21, %c0_22, %c0_23, %c0_24, %c19] : memref<1x1x1x16x256xbf16, #tpu.memory_space<vmem>>, vector<1x1x1x16x144xbf16>
    %13 = vector.shape_cast %12 : vector<1x1x1x16x144xbf16> to vector<16x144xbf16>
    %c64 = arith.constant 64 : index
    %c0_25 = arith.constant 0 : index
    %14 = vector.load %arg8[%c64, %c0_25] : memref<144x144xbf16, #tpu.memory_space<vmem>>, vector<16x144xbf16>
    tpu.vector_store %arg8[%c64, %c0_25], %13 {strides = array<i32>} : memref<144x144xbf16, #tpu.memory_space<vmem>>, vector<16x144xbf16>,
    %c0_26 = arith.constant 0 : index
    %c0_27 = arith.constant 0 : index
    %c0_28 = arith.constant 0 : index
    %c0_29 = arith.constant 0 : index
    %c20 = arith.constant 20 : index
    %15 = vector.load %arg2[%c0_26, %c0_27, %c0_28, %c0_29, %c20] : memref<1x1x1x16x256xbf16, #tpu.memory_space<vmem>>, vector<1x1x1x16x144xbf16>
    %16 = vector.shape_cast %15 : vector<1x1x1x16x144xbf16> to vector<16x144xbf16>
    %c80 = arith.constant 80 : index
    %c0_30 = arith.constant 0 : index
    %17 = vector.load %arg8[%c80, %c0_30] : memref<144x144xbf16, #tpu.memory_space<vmem>>, vector<16x144xbf16>
    tpu.vector_store %arg8[%c80, %c0_30], %16 {strides = array<i32>} : memref<144x144xbf16, #tpu.memory_space<vmem>>, vector<16x144xbf16>,
    %c0_31 = arith.constant 0 : index
    %c0_32 = arith.constant 0 : index
    %c0_33 = arith.constant 0 : index
    %c0_34 = arith.constant 0 : index
    %c36 = arith.constant 36 : index
    %18 = vector.load %arg2[%c0_31, %c0_32, %c0_33, %c0_34, %c36] : memref<1x1x1x16x256xbf16, #tpu.memory_space<vmem>>, vector<1x1x1x16x144xbf16>
    %19 = vector.shape_cast %18 : vector<1x1x1x16x144xbf16> to vector<16x144xbf16>
    %c96 = arith.constant 96 : index
    %c0_35 = arith.constant 0 : index
    %20 = vector.load %arg8[%c96, %c0_35] : memref<144x144xbf16, #tpu.memory_space<vmem>>, vector<16x144xbf16>
    tpu.vector_store %arg8[%c96, %c0_35], %19 {strides = array<i32>} : memref<144x144xbf16, #tpu.memory_space<vmem>>, vector<16x144xbf16>,
    %c0_36 = arith.constant 0 : index
    %c0_37 = arith.constant 0 : index
    %c0_38 = arith.constant 0 : index
    %c0_39 = arith.constant 0 : index
    %c37 = arith.constant 37 : index
    %21 = vector.load %arg2[%c0_36, %c0_37, %c0_38, %c0_39, %c37] : memref<1x1x1x16x256xbf16, #tpu.memory_space<vmem>>, vector<1x1x1x16x144xbf16>
    %22 = vector.shape_cast %21 : vector<1x1x1x16x144xbf16> to vector<16x144xbf16>
    %c112 = arith.constant 112 : index
    %c0_40 = arith.constant 0 : index
    %23 = vector.load %arg8[%c112, %c0_40] : memref<144x144xbf16, #tpu.memory_space<vmem>>, vector<16x144xbf16>
    tpu.vector_store %arg8[%c112, %c0_40], %22 {strides = array<i32>} : memref<144x144xbf16, #tpu.memory_space<vmem>>, vector<16x144xbf16>,
    %c0_41 = arith.constant 0 : index
    %c0_42 = arith.constant 0 : index
    %c0_43 = arith.constant 0 : index
    %c0_44 = arith.constant 0 : index
    %c38 = arith.constant 38 : index
    %24 = vector.load %arg2[%c0_41, %c0_42, %c0_43, %c0_44, %c38] : memref<1x1x1x16x256xbf16, #tpu.memory_space<vmem>>, vector<1x1x1x16x144xbf16>
    %25 = vector.shape_cast %24 : vector<1x1x1x16x144xbf16> to vector<16x144xbf16>
    %c128 = arith.constant 128 : index
    %c0_45 = arith.constant 0 : index
    %26 = vector.load %arg8[%c128, %c0_45] : memref<144x144xbf16, #tpu.memory_space<vmem>>, vector<16x144xbf16>
    tpu.vector_store %arg8[%c128, %c0_45], %25 {strides = array<i32>} : memref<144x144xbf16, #tpu.memory_space<vmem>>, vector<16x144xbf16>,
    %c0_46 = arith.constant 0 : index
    %c0_47 = arith.constant 0 : index
    %27 = vector.load %arg3[%c0_46, %c0_47] : memref<16x144xbf16, #tpu.memory_space<vmem>>, vector<16x144xbf16>
    %c0_48 = arith.constant 0 : index
    %c0_49 = arith.constant 0 : index
    %28 = vector.load %arg8[%c0_48, %c0_49] : memref<144x144xbf16, #tpu.memory_space<vmem>>, vector<144x144xbf16>
    %cst = arith.constant dense<0.000000e+00> : vector<16x144xf32>
    %29 = tpu.matmul %27, %28, %cst {dimension_numbers = #tpu.dot_dimension_numbers<[1], [0], [0], [1], [0, 0, 1, 1], [], []>} : vector<16x144xbf16>, vector<144x144xbf16>, vector<16x144xf32> -> vector<16x144xf32>
    %30 = arith.truncf %29 : vector<16x144xf32> to vector<16x144xbf16>
    %c0_50 = arith.constant 0 : index
    %c0_51 = arith.constant 0 : index
    %c0_52 = arith.constant 0 : index
    %c0_53 = arith.constant 0 : index
    %31 = vector.load %arg5[%c0_50, %c0_51, %c0_52, %c0_53] : memref<1x1x16x144xbf16, #tpu.memory_space<vmem>>, vector<1x1x16x144xbf16>
    %32 = vector.shape_cast %31 : vector<1x1x16x144xbf16> to vector<16x144xbf16>
    %33 = vector.shape_cast %30 : vector<16x144xbf16> to vector<1x1x16x144xbf16>
    tpu.vector_store %arg5[%c0_50, %c0_51, %c0_52, %c0_53], %33 {strides = array<i32>} : memref<1x1x16x144xbf16, #tpu.memory_space<vmem>>, vector<1x1x16x144xbf16>,
    %c0_54 = arith.constant 0 : index
    %c0_55 = arith.constant 0 : index
    %34 = vector.load %arg4[%c0_54, %c0_55] : memref<1x144xf32, #tpu.memory_space<vmem>>, vector<1x144xf32>
    %35 = vector.broadcast %34 : vector<1x144xf32> to vector<16x144xf32>
    %36 = arith.mulf %29, %35 : vector<16x144xf32>
    %cst_56 = arith.constant dense<0.000000e+00> : vector<16xf32>
    %37 = vector.multi_reduction <add>, %36, %cst_56 [1] : vector<16x144xf32> to vector<16xf32>
    %38 = vector.shape_cast %37 : vector<16xf32> to vector<16x1xf32>
    %c0_57 = arith.constant 0 : index
    %c0_58 = arith.constant 0 : index
    %c0_59 = arith.constant 0 : index
    %c0_60 = arith.constant 0 : index
    %39 = vector.load %arg6[%c0_57, %c0_58, %c0_59, %c0_60] : memref<1x1x16x1xf32, #tpu.memory_space<vmem>>, vector<1x1x16x1xf32>
    %40 = vector.shape_cast %39 : vector<1x1x16x1xf32> to vector<16x1xf32>
    %41 = vector.shape_cast %38 : vector<16x1xf32> to vector<1x1x16x1xf32>
    tpu.vector_store %arg6[%c0_57, %c0_58, %c0_59, %c0_60], %41 {strides = array<i32>} : memref<1x1x16x1xf32, #tpu.memory_space<vmem>>, vector<1x1x16x1xf32>,
    %42 = arith.mulf %29, %36 : vector<16x144xf32>
    %cst_61 = arith.constant dense<0.000000e+00> : vector<16xf32>
    %43 = vector.multi_reduction <add>, %42, %cst_61 [1] : vector<16x144xf32> to vector<16xf32>
    %44 = vector.shape_cast %43 : vector<16xf32> to vector<16x1xf32>
    %c0_62 = arith.constant 0 : index
    %c0_63 = arith.constant 0 : index
    %c0_64 = arith.constant 0 : index
    %c0_65 = arith.constant 0 : index
    %45 = vector.load %arg7[%c0_62, %c0_63, %c0_64, %c0_65] : memref<1x1x16x1xf32, #tpu.memory_space<vmem>>, vector<1x1x16x1xf32>
    %46 = vector.shape_cast %45 : vector<1x1x16x1xf32> to vector<16x1xf32>
    %47 = vector.shape_cast %44 : vector<16x1xf32> to vector<1x1x16x1xf32>
    tpu.vector_store %arg7[%c0_62, %c0_63, %c0_64, %c0_65], %47 {strides = array<i32>} : memref<1x1x16x1xf32, #tpu.memory_space<vmem>>, vector<1x1x16x1xf32>,
    return
  }
  func.func @transform_0(%arg0: i32, %arg1: i32) -> (i32, i32, i32, i32, i32) {
    %c0_i32 = arith.constant 0 : i32
    %c0_i32_0 = arith.constant 0 : i32
    %c0_i32_1 = arith.constant 0 : i32
    %c0_i32_2 = arith.constant 0 : i32
    return %arg0, %arg1, %c0_i32, %c0_i32_0, %c0_i32_1 : i32, i32, i32, i32, i32
  }
  func.func @transform_1(%arg0: i32, %arg1: i32) -> (i32, i32) {
    %c0_i32 = arith.constant 0 : i32
    %c0_i32_0 = arith.constant 0 : i32
    %c0_i32_1 = arith.constant 0 : i32
    return %c0_i32, %c0_i32_0 : i32, i32
  }
  func.func @transform_2(%arg0: i32, %arg1: i32) -> (i32, i32) {
    %c0_i32 = arith.constant 0 : i32
    %c0_i32_0 = arith.constant 0 : i32
    %c0_i32_1 = arith.constant 0 : i32
    return %c0_i32, %c0_i32_0 : i32, i32
  }
  func.func @transform_3(%arg0: i32, %arg1: i32) -> (i32, i32, i32, i32) {
    %c0_i32 = arith.constant 0 : i32
    %c0_i32_0 = arith.constant 0 : i32
    %c0_i32_1 = arith.constant 0 : i32
    return %arg0, %arg1, %c0_i32, %c0_i32_0 : i32, i32, i32, i32
  }
  func.func @transform_4(%arg0: i32, %arg1: i32) -> (i32, i32, i32, i32) {
    %c0_i32 = arith.constant 0 : i32
    %c0_i32_0 = arith.constant 0 : i32
    %c0_i32_1 = arith.constant 0 : i32
    return %arg0, %arg1, %c0_i32, %c0_i32_0 : i32, i32, i32, i32
  }
  func.func @transform_5(%arg0: i32, %arg1: i32) -> (i32, i32, i32, i32) {
    %c0_i32 = arith.constant 0 : i32
    %c0_i32_0 = arith.constant 0 : i32
    %c0_i32_1 = arith.constant 0 : i32
    return %arg0, %arg1, %c0_i32, %c0_i32_0 : i32, i32, i32, i32
  }
}

</mosaic_0001>

<bundles_post_ra>
// kernel: tpu_custom_call.1
= control target key start
LH: loop header
LB: loop body
LE: loop exit
PB: predicated region body
PF: predicated region fallthrough
CT: control target
= control target key end

     0   :  { %s1496_s0 = inlined_call_operand.hbm [shape: bf16[2,2,1,16,256], index: 0, kind: input, shape index: {}]   ;;  %s1497_s1 = inlined_call_operand.hbm [shape: bf16[16,144], index: 1, kind: input, shape index: {}]   ;;  %s1498_s2 = inlined_call_operand.vmem [shape: f32[1,144], index: 2, kind: input, shape index: {}]   ;;  %s1499_s3 = inlined_call_operand.hbm [shape: bf16[2,2,16,144], index: 3, kind: output, shape index: {0}]   ;;  %s1500_s4 = inlined_call_operand.vmem [shape: f32[2,2,16,1], index: 4, kind: output, shape index: {1}]   ;;  %s1501_s5 = inlined_call_operand.vmem [shape: f32[2,2,16,1], index: 5, kind: output, shape index: {2}]  }
   0x1   :  { %1513 = sst [smem:[#allocation17_spill]] %s1497_s1 }
   0x2   :  { %1514 = sst [smem:[#allocation18_spill]] %s1501_s5 }
   0x3   :  { %11 = vsyncpa [#allocation4], 0 }
   0x4   :  { %13 = vsyncpa [#allocation4 + $0x1], 0 }
   0x5   :  { %14 = vsyncpa [#allocation7], 0 }
   0x6   :  { %15 = vsyncpa [#allocation5], 0 }
   0x7   :  { %17 = vsyncpa [#allocation5 + $0x1], 0  ;;  %s1216_s18 = smov 0   ;;  %s1218_s19 = smov 0  }
   0x8   :  { %s1220_s20 = smov 0   ;;  %s1222_s21 = smov 0  }
   0x9   :  { %s1224_s22 = smov 0   ;;  %s1226_s23 = smov 0  }
   0xa   :  { %s1228_s24 = smov 0   ;;  %s1230_s25 = smov 0  }
   0xb LB: > { %1515 = sst [smem:[#allocation12_spill]] %s1141_s18  ;;  %s852_s26 = sadd.s32 4294967295, %s1169_s25   ;;  %s1169_s25 = sphi %s1230_s25, %s23_s25   ;;  %s1165_s24 = sphi %s1228_s24, %s1547_s24   ;;  %s1161_s23 = sphi %s1226_s23, %s1541_s23   ;;  %s1157_s22 = sphi %s1224_s22, %s1546_s22   ;;  %s1153_s21 = sphi %s1222_s21, %s1540_s21   ;;  %s1149_s20 = sphi %s1220_s20, %s1545_s20   ;;  %s1145_s19 = sphi %s1218_s19, %s1544_s19   ;;  %s1141_s18 = sphi %s1216_s18, %s1543_s18  }
   0xc   : > { %1516 = sst [smem:[#allocation13_spill]] %s1161_s23  ;;  %s853_s27 = sadd.s32 4294967294, %s1169_s25  }
   0xd   : > { %p57_p0 = scmp.ne.s32.totalorder %s1145_s19, %s1141_s18  ;;  %p1260_p1 = scmp.eq.s32.totalorder %s852_s26, 0 }
   0xe   : > { %p1264_p2 = scmp.eq.s32.totalorder %s852_s26, 3  ;;  %p131_p3 = scmp.eq.s32.totalorder %s853_s27, 3 }
   0xf   : > { %s1517_s28 = scalar_select %p1260_p1, 1, 0 }
  0x10   : > { %s1518_s29 = scalar_select %p1264_p2, 1, 0 }
  0x11   : > { %p1270_p4 = por %p1260_p1, %p57_p0  ;;  %p854_p5 = scmp.ge.s32.totalorder %s1169_s25, 1 }
  0x12   : > { %p1275_p6 = por %p131_p3, %p57_p0  ;;  %p194_p7 = scmp.lt.s32.totalorder %s1169_s25, 5 }
  0x13   : > { %s1519_s30 = scalar_select %p1270_p4, 1, 0 }
  0x14   : > { %s1520_s6 = scalar_select %p1275_p6, 1, 0 }
  0x15   : > { %p1280_p8 = pnand %p854_p5, %p194_p7  ;;  %s1171_s8 = smov [#allocation6]  }
  0x16   : > { %1521 = sst [smem:[#allocation14_spill]] %s1520_s6  ;;  %s206_s9 = sshll.u32 %s1171_s8, 4  ;;  %s207_s9 = int_to_ptr.vmem [resolvable:$true] %s206_s9 }
  0x17   : > { %s1522_s7 = scalar_select %p1280_p8, 1, 0 }
  0x18   : > { %p910_p9 = pneg %p1280_p8  ;;  %s1524_s1 = sld [smem:[#allocation17_spill]] }
  0x1a   : > { %p1288_p10 = pnand %p910_p9, %p1260_p1 }
  0x1c   : > { %p1011_p12 = pneg %p1288_p10 }
  0x1e   : > { %s1009_s13 = scalar_lea.hbm %s1524_s1, 256 }
  0x1f   : > { %p1010_p11 = scmp.ne.s32.totalorder %s1524_s1, %s1009_s13  ;;  %p1016_p3 = scmp.lt.u32.totalorder %s1009_s13, %s1524_s1 }
  0x21   : > { %p1012_p13 = pnand %p1011_p12, %p1010_p11 }
  0x23   : > { %p1013_p0 = pneg %p1012_p13 }
  0x25   : > { %p1018_p5 = pnand %p1016_p3, %p1013_p0 }
  0x27   : > { %1021 = shalt.err (!%p1018_p5)
}
  0x28   : > { %s1022_s26 = scalar_lea.vmem %s207_s9, 256  ;;  %p1030_p1 = scmp.lt.s32.totalorder %s207_s9, %s207_s9 }
  0x29   : > { %p1023_p7 = scmp.ne.s32.totalorder %s207_s9, %s1022_s26  ;;  %p1031_p4 = scmp.lt.s32.totalorder %s1022_s26, %s1022_s26 }
  0x2b   : > { %p1025_p9 = pnand %p1023_p7, %p1011_p12  ;;  %p1032_p8 = por %p1031_p4, %p1030_p1 }
  0x2d   : > { %p1026_p6 = pneg %p1025_p9 }
  0x2f   : > { %p1033_p2 = pnand %p1032_p8, %p1026_p6 }
  0x31   : > { %1036 = shalt.err (!%p1033_p2)
}
  0x32   : > { %s1506_s27 = smov 128   ;;  %s1507_s8 = smov 8  }
  0x33   : > { %913 = dma.hbm_to_vmem [thread:$0]  (!%p1288_p10), %s1524_s1, 256, %s207_s9, [#allocation7], %s1506_s27, %s1506_s27, %s1507_s8  }
  0x34   : > { %s32_s13 = sadd.s32 1, %s1161_s23  ;;  %s35_s14 = sadd.s32 1, %s1165_s24 }
  0x35   : > { %p33_p1 = scmp.ge.s32.totalorder %s32_s13, 2  ;;  %s44_s15 = sadd.s32 1, %s1149_s20 }
  0x36   : > { %p51_p2 = scmp.ne.s32.totalorder %s1149_s20, %s1145_s19  ;;  %p52_p4 = scmp.eq.s32.totalorder %s1169_s25, 0 }
  0x37   : > { %s1549_s13 = smov (%p33_p1, %s32_s13), 0  ;;  %s1551_s14 = smov (!%p33_p1, %s35_s14), %s1165_s24 }
  0x38   : > { %1525 = sst [smem:[#allocation15_spill]] %s1549_s13  ;;  %s40_s10 = ssub.s32 %s1161_s23, %s1549_s13 }
  0x39   : > { %p37_p6 = scmp.ge.s32.totalorder %s1551_s14, 2  ;;  %p1526_p8 = scmp.ne.s32.totalorder %s1518_s29, 0 }
  0x3a   : > { %p1328_p10 = por %p52_p4, %p51_p2  ;;  %p923_p12 = scmp.lt.s32.totalorder %s1169_s25, 4 }
  0x3b   : > { %p1324_p11 = por %p1526_p8, %p51_p2  ;;  %s1553_s14 = smov (%p37_p6, %s1551_s14), 0 }
  0x3c   : > { %1529 = sst [smem:[#allocation16_spill]] %s1553_s14  ;;  %s223_s17 = sand.u32 1, %s1149_s20  }
  0x3d   : > { %s858_s26 = sshll.u32 %s1161_s23, 2  ;;  %s39_s11 = ssub.s32 %s1165_s24, %s1553_s14 }
  0x3e   : > { %s41_s12 = sor.u32 %s40_s10, %s39_s11  ;;  %s857_s27 = sshll.u32 %s223_s17, 4 }
  0x3f   : > { %p42_p13 = scmp.eq.s32.totalorder %s41_s12, 0  ;;  %s859_s29 = sshll.u32 %s1165_s24, 3 }
  0x40   : > { %s227_s8 = scalar_lea.vmem [#allocation3], %s857_s27  ;;  %s233_s6 = sadd.s32 %s859_s29, %s858_s26 }
  0x41   : > { %s236_s1 = sshll.u32 %s227_s8, 4  ;;  %s860_s18 = sshll.u32 %s233_s6, 6  ;;  %s1343_s1 = int_to_ptr.vmem [resolvable:$true] %s236_s1 }
  0x42   : > { %s1341_s13 = scalar_select %p42_p13, %s1149_s20, %s44_s15  }
  0x43   : > { %p1349_p0 = pnand %p923_p12, %p1328_p10  ;;  %s1356_s10 = scalar_lea.hbm %s1496_s0, %s860_s18 }
  0x44   : > { %s1358_s27 = scalar_lea.sflag [#allocation4], %s223_s17  ;;  %s1037_s6 = scalar_lea.hbm %s1356_s10, 256 }
  0x45   : > { %p1038_p3 = scmp.ne.s32.totalorder %s1356_s10, %s1037_s6  ;;  %p1039_p5 = pneg %p1349_p0 }
  0x46   : > { %s1042_s14 = scalar_lea.hbm %s1496_s0, 1024  ;;  %p1043_p1 = scmp.lt.u32.totalorder %s1356_s10, %s1496_s0 }
  0x47   : > { %p1040_p7 = pnand %p1039_p5, %p1038_p3  ;;  %p1044_p2 = scmp.lt.u32.totalorder %s1042_s14, %s1037_s6 }
  0x48   : > { %p1046_p6 = scmp.lt.u32.totalorder %s1037_s6, %s1356_s10 }
  0x49   : > { %p1041_p9 = pneg %p1040_p7  ;;  %p1045_p4 = por %p1044_p2, %p1043_p1 }
  0x4b   : > { %p1047_p8 = por %p1046_p6, %p1045_p4 }
  0x4d   : > { %p1048_p10 = pnand %p1047_p8, %p1041_p9 }
  0x4f   : > { %1051 = shalt.err (!%p1048_p10)
}
  0x50   : > { %s1052_s9 = scalar_lea.vmem %s1343_s1, 256  ;;  %s1174_s17 = smov [#allocation3]  }
  0x51   : > { %p1053_p12 = scmp.ne.s32.totalorder %s1343_s1, %s1052_s9  ;;  %s1057_s26 = sshll.u32 %s1174_s17, 4  ;;  %s1058_s26 = int_to_ptr.vmem [resolvable:$false] %s1057_s26 }
  0x52   : > { %s1059_s11 = scalar_lea.vmem %s1058_s26, 512  ;;  %p1060_p7 = scmp.lt.s32.totalorder %s1343_s1, %s1058_s26 }
  0x53   : > { %p1055_p13 = pnand %p1053_p12, %p1039_p5  ;;  %p1061_p1 = scmp.lt.s32.totalorder %s1059_s11, %s1052_s9 }
  0x55   : > { %p1056_p3 = pneg %p1055_p13  ;;  %p1062_p2 = por %p1061_p1, %p1060_p7 }
  0x57   : > { %p1063_p4 = pnand %p1062_p2, %p1056_p3 }
  0x59   : > { %1066 = shalt.err (!%p1063_p4)
}
  0x5a   : > { %s1531_s12 = smov 8   ;;  %s1532_s29 = smov 128  }
  0x5b   : > { %917 = dma.hbm_to_vmem [thread:$0]  (!%p1349_p0), %s1356_s10, 256, %s1343_s1, %s1358_s27, %s1532_s29, %s1532_s29, %s1531_s12  }
  0x5c   : > { %p1533_p5 = scmp.ne.s32.totalorder %s1522_s7, 0 }
  0x5d   : > { %s1392_s6 = sand.u32 (!%p1533_p5), 1, %s1145_s19   ;;  %p1534_p9 = scmp.ne.s32.totalorder (!%p1533_p5), %s1519_s30, 0 }
  0x5e   : > { %248 = sbr.rel (%p1533_p5) target bundleno = 635 (0x27b), region = 32  ;;  %s862_s8 = sshll.u32 (!%p1533_p5), %s1392_s6, 4 }
  0x5f   : > { %s251_s23 = scalar_lea.sflag (!%p1533_p5), [#allocation4], %s1392_s6  ;;  %s254_s5 = scalar_lea.vmem (!%p1533_p5), [#allocation3], %s862_s8 }
  0x65   : > { %1128 = dma.done.wait (%p1534_p9), %s251_s23, 256  }
  0x66   : > { %1130 = vsyncadd (%p1534_p9), %s251_s23, 4294967040  ;;  %p1535_p0 = scmp.ne.s32.totalorder %s1517_s28, 0 }
  0x68   : > { %1132 = dma.done.wait (%p1535_p0), [#allocation7], 256  }
  0x69   : > { %1134 = vsyncadd (%p1535_p0), [#allocation7], 4294967040  ;;  %v1003_v0 = vld [vmem:[%s254_s5] ss:$8 sps:$4 sm:$0xff]   ;;  %vm335_vm0 = vcmask 130048   ;;  %s1175_s1 = smov 126   ;;  %v591_v37 = vlaneseq }
  0x6a   : > { %v1005_v1 = vld [vmem:[%s254_s5 + $0x4] ss:$8 sps:$4 sm:$0xff]   ;;  %367 = vrot.lane.b32.xlu1 %v1003_v0, %s1175_s1  ;;  %s1176_s7 = smov 127   ;;  %s1177_s10 = smov 110   ;;  %vm371_vm1 = vcmask 1031168   ;;  %vm351_vm2 = vcmask 1039360  }
  0x6b   : > { %347 = vrot.lane.b32.xlu0 %v1003_v0, %s1176_s7  ;;  %336 = vst.msk [vmem:[#allocation2 + $0x8] sm:$0xff] %vm335_vm0, %v1005_v1  ;;  %s1178_s30 = smov 109   ;;  %s1179_s28 = smov 108   ;;  %v1008_v3 = vld [vmem:[#allocation6 + $0x4] ss:$8 sps:$4 sm:$0xff]   ;;  %vm391_vm3 = vcmask 900096  }
  0x6c   : > { %s1180_s27 = smov 92   ;;  %s1181_s14 = smov 91   ;;  %891 = vmatprep.mubr.msk.bf16.mxu0 %vm335_vm0, %v1008_v3  ;;  %vm411_vm4 = vcmask 891904   ;;  %vm431_vm5 = vcmask 883712   ;;  %vm451_vm6 = vcmask 752640   ;;  %vm471_vm7 = vcmask 744448  }
  0x6d   : > { %s1182_s18 = smov 90   ;;  %vm491_vm8 = vcmask 736256   ;;  %v1006_v36 = vld [vmem:[#allocation6] ss:$8 sps:$4 sm:$0xff]   ;;  %v592_v38 = vshrl.u32 %v591_v37, 7  ;;  %vm584_vm9 = vcmask 1043456  }
  0x6e   : > { %369 = vrot.lane.b32.xlu1 %v1005_v1, %s1175_s1  ;;  %v589_v40 = vld [vmem:[%s1498_s2] sm:$0x3]  ;;  %vm585_vm10 = vcmask 130052   ;;  %s280_s17 = scalar_lea.vmem [#allocation8], %s862_s8  ;;  %s895_s26 = sshll.u32 %s1153_s21, 2 }
  0x6f   : > { %349 = vrot.lane.b32.xlu0 %v1005_v1, %s1176_s7  ;;  %v593_v39 = vsub.s32 0, %v592_v38  ;;  %v597_v41 = vsub.s32 1, %v592_v38  ;;  %vm586_vm11 = vmor %vm585_vm10, %vm584_vm9  ;;  %s896_s11 = sshll.u32 %s1157_s22, 3  ;;  %s664_s8 = sshll.u32 %s280_s17, 4  ;;  %s1432_s8 = int_to_ptr.vmem [resolvable:$true] %s664_s8 }
  0x70   : > { %s661_s12 = sadd.s32 %s896_s11, %s895_s26  ;;  %s631_s7 = scalar_lea.sflag [#allocation5], %s1392_s6 }
  0x71   : > { %v594_v42 = vrot.slane %v589_v40, %v593_v39  ;;  %v598_v43 = vrot.slane %v589_v40, %v597_v41  ;;  %s897_s29 = sshll.u32 %s661_s12, 6 }
  0x72   : > { %389 = vrot.lane.b32.xlu1 %v1005_v1, %s1177_s10  ;;  %v500_v2 = vld [vmem:[#allocation2 + $0x8] sm:$0xff]  ;;  %s1430_s1 = scalar_lea.hbm %s1499_s3, %s897_s29 }
  0x73   : > { %387 = vrot.lane.b32.xlu0 %v1003_v0, %s1177_s10  ;;  %529 = vmatprep.subr.bf16.mxu0 %v500_v2  ;;  %s1067_s10 = scalar_lea.vmem %s1432_s8, 256 }
  0x74   : > { %530 = vmatpush1.bf16.msra.mxu0 %v1003_v0  ;;  %p1068_p6 = scmp.ne.s32.totalorder %s1432_s8, %s1067_s10 }
  0x76   : > { %409 = vrot.lane.b32.xlu1 %v1005_v1, %s1178_s30  ;;  %p1069_p8 = pnand %p1068_p6, %p1324_p11 }
  0x77   : > { %407 = vrot.lane.b32.xlu0 %v1003_v0, %s1178_s30  ;;  %s1183_s30 = smov [#allocation8]  }
  0x78   : > { %p1070_p10 = pneg %p1069_p8 }
  0x7a   : > { %429 = vrot.lane.b32.xlu1 %v1005_v1, %s1179_s28 }
  0x7b   : > { %427 = vrot.lane.b32.xlu0 %v1003_v0, %s1179_s28  ;;  %s1071_s28 = sshll.u32 %s1183_s30, 4  ;;  %s1072_s28 = int_to_ptr.vmem [resolvable:$false] %s1071_s28 }
  0x7c   : > { %p1074_p12 = scmp.lt.s32.totalorder %s1432_s8, %s1072_s28 }
  0x7e   : > { %449 = vrot.lane.b32.xlu1 %v1005_v1, %s1180_s27 }
  0x7f   : > { %447 = vrot.lane.b32.xlu0 %v1003_v0, %s1180_s27  ;;  %s1073_s27 = scalar_lea.vmem %s1072_s28, 512 }
  0x80   : > { %p1075_p13 = scmp.lt.s32.totalorder %s1073_s27, %s1067_s10 }
  0x82   : > { %469 = vrot.lane.b32.xlu1 %v1005_v1, %s1181_s14  ;;  %p1076_p3 = por %p1075_p13, %p1074_p12 }
  0x83   : > { %467 = vrot.lane.b32.xlu0 %v1003_v0, %s1181_s14 }
  0x84   : > { %p1077_p7 = pnand %p1076_p3, %p1070_p10 }
  0x86   : > { %489 = vrot.lane.b32.xlu1 %v1005_v1, %s1182_s18 }
  0x87   : > { %487 = vrot.lane.b32.xlu0 %v1003_v0, %s1182_s18 }
  0xdc   : > { %v368_v4 = vpop.permute.xlu1 %367 }
  0xdd   : > { %v348_v5 = vpop.permute.xlu0 %347 }
  0xe0   : > { %v370_v6 = vpop.permute.xlu1 %369 }
  0xe1   : > { %v350_v7 = vpop.permute.xlu0 %349  ;;  %v372_v8 = vsel %vm371_vm1, %v368_v4, %v370_v6  ;;  %376 = vst.msk [vmem:[#allocation2 + $0x28] sm:$0xff] %vm335_vm0, %v370_v6 }
  0xe2   : > { %v352_v9 = vsel %vm351_vm2, %v348_v5, %v350_v7  ;;  %356 = vst.msk [vmem:[#allocation2 + $0x18] sm:$0xff] %vm335_vm0, %v350_v7 }
  0xe4   : > { %v390_v10 = vpop.permute.xlu1 %389 }
  0xe5   : > { %v388_v11 = vpop.permute.xlu0 %387  ;;  %396 = vst.msk [vmem:[#allocation2 + $0x38] sm:$0xff] %vm335_vm0, %v390_v10 }
  0xe6   : > { %v392_v12 = vsel %vm391_vm3, %v388_v11, %v390_v10 }
  0xe8   : > { %v410_v14 = vpop.permute.xlu1 %409  ;;  %v504_v16 = vld [vmem:[#allocation2 + $0x28] sm:$0xff] }
  0xe9   : > { %v502_v13 = vld [vmem:[#allocation2 + $0x18] sm:$0xff]  ;;  %v408_v15 = vpop.permute.xlu0 %407  ;;  %416 = vst.msk [vmem:[#allocation2 + $0x48] sm:$0xff] %vm335_vm0, %v410_v14 }
  0xea   : > { %531 = vmatprep.subr.bf16.mxu0 %v502_v13  ;;  %v412_v17 = vsel %vm411_vm4, %v408_v15, %v410_v14 }
  0xeb   : > { %532 = vmatpush1.bf16.msra.mxu0 %v352_v9 }
  0xec   : > { %533 = vmatprep.subr.bf16.mxu0 %v504_v16  ;;  %v430_v18 = vpop.permute.xlu1 %429  ;;  %v506_v20 = vld [vmem:[#allocation2 + $0x38] sm:$0xff] }
  0xed   : > { %v428_v19 = vpop.permute.xlu0 %427  ;;  %436 = vst.msk [vmem:[#allocation2 + $0x58] sm:$0xff] %vm335_vm0, %v430_v18 }
  0xee   : > { %v432_v21 = vsel %vm431_vm5, %v428_v19, %v430_v18 }
  0xef   : > { %534 = vmatpush1.bf16.msra.mxu0 %v372_v8 }
  0xf0   : > { %535 = vmatprep.subr.bf16.mxu0 %v506_v20  ;;  %v450_v22 = vpop.permute.xlu1 %449  ;;  %v508_v24 = vld [vmem:[#allocation2 + $0x48] sm:$0xff] }
  0xf1   : > { %v448_v23 = vpop.permute.xlu0 %447  ;;  %456 = vst.msk [vmem:[#allocation2 + $0x68] sm:$0xff] %vm335_vm0, %v450_v22 }
  0xf2   : > { %v452_v25 = vsel %vm451_vm6, %v448_v23, %v450_v22 }
  0xf3   : > { %536 = vmatpush1.bf16.msra.mxu0 %v392_v12 }
  0xf4   : > { %537 = vmatprep.subr.bf16.mxu0 %v508_v24  ;;  %v470_v26 = vpop.permute.xlu1 %469  ;;  %v510_v28 = vld [vmem:[#allocation2 + $0x58] sm:$0xff] }
  0xf5   : > { %v468_v27 = vpop.permute.xlu0 %467  ;;  %476 = vst.msk [vmem:[#allocation2 + $0x78] sm:$0xff] %vm335_vm0, %v470_v26 }
  0xf6   : > { %v472_v29 = vsel %vm471_vm7, %v468_v27, %v470_v26 }
  0xf7   : > { %538 = vmatpush1.bf16.msra.mxu0 %v412_v17 }
  0xf8   : > { %539 = vmatprep.subr.bf16.mxu0 %v510_v28  ;;  %v490_v30 = vpop.permute.xlu1 %489  ;;  %v512_v32 = vld [vmem:[#allocation2 + $0x68] sm:$0xff] }
  0xf9   : > { %v488_v31 = vpop.permute.xlu0 %487  ;;  %496 = vst.msk [vmem:[#allocation2 + $0x88] sm:$0xff] %vm335_vm0, %v490_v30 }
  0xfa   : > { %v492_v33 = vsel %vm491_vm8, %v488_v31, %v490_v30 }
  0xfb   : > { %540 = vmatpush1.bf16.msra.mxu0 %v432_v21 }
  0xfc   : > { %541 = vmatprep.subr.bf16.mxu0 %v512_v32  ;;  %v514_v34 = vld [vmem:[#allocation2 + $0x78] sm:$0xff] }
  0xff   : > { %542 = vmatpush1.bf16.msra.mxu0 %v452_v25 }
 0x100   : > { %543 = vmatprep.subr.bf16.mxu0 %v514_v34  ;;  %v516_v35 = vld [vmem:[#allocation2 + $0x88] sm:$0xff] }
 0x103   : > { %544 = vmatpush1.bf16.msra.mxu0 %v472_v29 }
 0x104   : > { %545 = vmatprep.subr.bf16.mxu0 %v516_v35 }
 0x107   : > { %546 = vmatpush1.bf16.msra.mxu0 %v492_v33 }
 0x10a   : > { %562 = vmatmul.mubr.bf16.vlgmr.msra.gmra.mrb[0].mxu0 %v1006_v36 }
 0x1dd   : > { %v563_v44 = vpop.f32.mrb[0].mxu0 }
 0x1de   : > { %v565_v45 = vpop.f32.mrb[1].mxu0  ;;  %v601_v46 = vmul.f32 %v594_v42, %v563_v44 }
 0x1df   : > { %v900_v47 = vpack.c.bf16 %v565_v45, %v563_v44  ;;  %v602_v48 = vmul.f32 %v598_v43, %v565_v45  ;;  %v567_v49 = vpop.f32.mrb[2].mxu0 }
 0x1e0   : > { %v569_v50 = vpop.f32.mrb[3].mxu0  ;;  %v603_v51 = vmul.f32 %v594_v42, %v567_v49  ;;  %v616_v57 = vmul.f32 %v601_v46, %v563_v44 }
 0x1e1   : > { %587 = vst.msk [vmem:[%s280_s17] sm:$0xff] %vm586_vm11, %v900_v47  ;;  %v617_v52 = vmul.f32 %v602_v48, %v565_v45  ;;  %v901_v53 = vpack.c.bf16 %v569_v50, %v567_v49  ;;  %v604_v54 = vmul.f32 %v598_v43, %v569_v50  ;;  %v605_v55 = vsel %vm335_vm0, %v602_v48, 0.0 }
 0x1e2   : > { %v606_v56 = vadd.f32 %v605_v55, %v601_v46  ;;  %v618_v63 = vmul.f32 %v603_v51, %v567_v49 }
 0x1e3   : > { %588 = vst.msk [vmem:[%s280_s17 + $0x8] sm:$0xff] %vm586_vm11, %v901_v53  ;;  %v619_v58 = vmul.f32 %v604_v54, %v569_v50  ;;  %v609_v59 = vsel %vm335_vm0, %v604_v54, 0.0  ;;  %v620_v60 = vsel %vm335_vm0, %v617_v52, 0.0 }
 0x1e4   : > { %607 = vadd.xlane.f32.xlu0 %v606_v56  ;;  %v610_v61 = vadd.f32 %v609_v59, %v603_v51  ;;  %v621_v62 = vadd.f32 %v620_v60, %v616_v57 }
 0x1e5   : > { %v624_v0 = vsel %vm335_vm0, %v619_v58, 0.0 }
 0x1e6   : > { %611 = vadd.xlane.f32.xlu1 %v610_v61  ;;  %v625_v1 = vadd.f32 %v624_v0, %v618_v63 }
 0x1e8   : > { %622 = vadd.xlane.f32.xlu0 %v621_v62 }
 0x1ec   : > { %626 = vadd.xlane.f32.xlu0 %v625_v1 }
 0x1ed   : > { %1080 = shalt.err (!%p1077_p7)
}
 0x1ee   : > { %s1081_s14 = scalar_lea.hbm %s1430_s1, 256  ;;  %s1085_s9 = scalar_lea.hbm %s1499_s3, 1024 }
 0x1ef   : > { %p1082_p1 = scmp.ne.s32.totalorder %s1430_s1, %s1081_s14  ;;  %p1086_p5 = scmp.lt.u32.totalorder %s1430_s1, %s1499_s3 }
 0x1f0   : > { %p1087_p9 = scmp.lt.u32.totalorder %s1085_s9, %s1081_s14  ;;  %p1089_p6 = scmp.lt.u32.totalorder %s1081_s14, %s1430_s1 }
 0x1f1   : > { %p1083_p2 = pnand %p1082_p1, %p1324_p11 }
 0x1f2   : > { %p1088_p0 = por %p1087_p9, %p1086_p5 }
 0x1f3   : > { %p1084_p4 = pneg %p1083_p2 }
 0x1f4   : > { %p1090_p8 = por %p1089_p6, %p1088_p0 }
 0x1f6   : > { %p1091_p10 = pnand %p1090_p8, %p1084_p4 }
 0x1f8   : > { %1094 = shalt.err (!%p1091_p10)
}
 0x1f9   : > { %s1184_s11 = smov 128   ;;  %s1185_s12 = smov 8   ;;  %vm613_vm12 = vcmask 7168  }
 0x1fa   : > { %908 = dma.vmem_to_hbm [thread:$0]  (%p1324_p11), %s1432_s8, 256, %s1430_s1, %s631_s7, %s1184_s11, %s1184_s11, %s1185_s12  }
 0x1fb   : > { %p303_p12 = scmp.lt.s32.totalorder %s1157_s22, 1  ;;  %p305_p13 = scmp.lt.s32.totalorder %s1153_s21, 1 }
 0x1fc   : > { %s1536_s6 = sld [smem:[#allocation18_spill]] }
 0x1fd   : > { %s1555_s22 = smov (!%p303_p12, %s1157_s22), 1  ;;  %s1557_s21 = smov (!%p305_p13, %s1153_s21), 1 }
 0x1fe   : > { %s865_s29 = sshll.u32 %s1557_s21, 1  ;;  %s866_s23 = sshll.u32 %s1555_s22, 2 }
 0x1ff   : > { %s309_s5 = sadd.s32 %s866_s23, %s865_s29 }
 0x200   : > { %s867_s10 = sshll.u32 %s309_s5, 3 }
 0x201   : > { %s311_s27 = scalar_lea.vmem %s1500_s4, %s867_s10 }
 0x202   : > { %s320_s8 = scalar_lea.vmem %s1536_s6, %s867_s10 }
 0x271   : > { %v608_v2 = vpop.xlane.xlu0 %607 }
 0x272   : > { %614 = vst.msk [vmem:[%s311_s27] sm:$0xff] %vm613_vm12, %v608_v2 }
 0x273   : > { %v612_v3 = vpop.xlane.xlu1 %611 }
 0x274   : > { %615 = vst.msk [vmem:[%s311_s27 + $0x8] sm:$0xff] %vm613_vm12, %v612_v3 }
 0x275   : > { %v623_v4 = vpop.xlane.xlu0 %622 }
 0x276   : > { %628 = vst.msk [vmem:[%s320_s8] sm:$0xff] %vm613_vm12, %v623_v4 }
 0x279   : > { %v627_v5 = vpop.xlane.xlu0 %626 }
 0x27a   : > { %629 = vst.msk [vmem:[%s320_s8 + $0x8] sm:$0xff] %vm613_vm12, %v627_v5 }
 0x27b PF: > { %s1537_s21 = sld [smem:[#allocation12_spill]]  ;;  %s1538_s22 = sld [smem:[#allocation14_spill]] }
 0x27c   : > { %p925_p11 = scmp.ge.s32.totalorder %s1169_s25, 2 }
 0x281   : > { %s685_s1 = sand.u32 1, %s1537_s21   ;;  %p1539_p3 = scmp.ne.s32.totalorder %s1538_s22, 0 }
 0x282   : > { %s686_s7 = scalar_lea.sflag [#allocation5], %s685_s1 }
 0x283   : > { %p919_p7 = pnand %p925_p11, %p1539_p3 }
 0x285   : > { %1136 = dma.done.wait (!%p919_p7), %s686_s7, 256  }
 0x286   : > { %1138 = vsyncadd (!%p919_p7), %s686_s7, 4294967040  ;;  %s23_s25 = sadd.s32 1, %s1169_s25   ;;  %s1540_s21 = sld [smem:[#allocation13_spill]] }
 0x287   : > { %p20_p1 = scmp.ge.s32.totalorder %s23_s25, 6   ;;  %s1541_s23 = sld [smem:[#allocation15_spill]] }
 0x288   : > { %s1542_s15 = sld [smem:[#allocation16_spill]]  ;;  %s1543_s18 = smov %s1145_s19 }
 0x289   : > { %s1544_s19 = smov %s1149_s20  ;;  %s1545_s20 = smov %s1341_s13 }
 0x28a   : > { %s1546_s22 = smov %s1165_s24  ;;  %22 = sbr.rel (!%p20_p1) target bundleno = 11 (0xb), region = 105 }
 0x28e   : > { %s1547_s24 = smov %s1542_s15 }
 0x291   :  { %715 = vsyncpa [#allocation4], 1 }
 0x292   :  { %717 = vsyncpa [#allocation4 + $0x1], 1 }
 0x293   :  { %718 = vsyncpa [#allocation7], 1 }
 0x294   :  { %719 = vsyncpa [#allocation5], 1 }
 0x295   :  { %721 = vsyncpa [#allocation5 + $0x1], 1 }

</bundles_post_ra>
